<compile_context>
chip_gen: v6e
topology: v6e:2x2x1
jax: 0.10.0
libtpu: 0.0.40
codegen_flags: <defaults>
</compile_context>

<pallas_src>
import functools

import jax
import jax.numpy as jnp
from jax import lax
from jax.experimental import pallas as pl
from jax.experimental.pallas import tpu as pltpu

LANES = 512        # lane-dense minor axis of the streaming slab (4 * 128)
OUT_LANES = 128    # per-core partial-sum output block (one lane tile)
NUM_SPLITS = 2     # leading "parallel" grid axis for the MSE reduction
TILE_ROWS = 2048   # 2048 x 512 x 4 B = 4 MiB f32 block (fits all generations)


# --------------------------------------------------------------------------
# Chip-aware sizing
# --------------------------------------------------------------------------
def _vmem_capacity_bytes():
    try:
        info = pltpu.get_tpu_info()
        for name in ("vmem_capacity_bytes", "vmem_bytes"):
            cap = getattr(info, name, None)
            if cap:
                return int(cap)
    except Exception:
        pass
    return 128 * 1024 * 1024


def _chip_budget():
    """(max_tile_rows, vmem_limit_bytes) sized per TPU generation."""
    cap = _vmem_capacity_bytes()
    if cap <= 96 * 1024 * 1024:
        # v7x-class: 64 MiB VMEM per TensorCore -> cap the scoped limit with
        # headroom; 4 MiB blocks keep 2x(in)+2x(out) buffers + elementwise
        # temporaries comfortably inside it while amortising step overhead.
        return TILE_ROWS, 48 * 1024 * 1024
    # v5e / v6e-class: 128 MiB physical VMEM -> raise the (default 16/32 MiB)
    # scoped limit so 4 MiB blocks pipeline freely.
    return TILE_ROWS, 64 * 1024 * 1024


# --------------------------------------------------------------------------
# Layout helper (plain-JAX glue)
# --------------------------------------------------------------------------
def _slab_view(x):
    """Lane-dense (rows, LANES) view of x.

    Pure reshape (no pad, no slice-back) when x.size is a multiple of LANES;
    only otherwise falls back to zero-padding the flat tail (< LANES elems).
    """
    total = x.size
    rows = (total + LANES - 1) // LANES
    if total % LANES == 0:
        return x.reshape(rows, LANES), rows, False
    # TODO(synk): handle the <LANES ragged element tail fully in-kernel
    # (1-D view + flat-index mask) to avoid this materialising pad.
    flat = jnp.pad(x.reshape(-1), (0, rows * LANES - total))
    return flat.reshape(rows, LANES), rows, True


# --------------------------------------------------------------------------
# Kernels
# --------------------------------------------------------------------------
def _identity_copy_kernel(x_ref, o_ref):
    # enc = nn.Identity(); dec = nn.Identity()  ->  forward(x) = x.
    o_ref[...] = x_ref[...]


def _mse_kernel(x_ref, y_ref, o_ref, acc_ref, *, rows, tile_rows, bpc, masked):
    c = pl.program_id(0)          # parallel split (one per TensorCore on v7x)
    i = pl.program_id(1)          # sequential reduction over row blocks

    @pl.when(i == 0)
    def _():
        acc_ref[...] = jnp.zeros_like(acc_ref)

    d = x_ref[...].astype(jnp.float32) - y_ref[...].astype(jnp.float32)
    sq = d * d

    if masked:
        # Zero rows outside this block's true range: the ragged last block and
        # (for odd block counts) the clamped duplicate block of split c == 1.
        row0 = (c * bpc + i) * tile_rows
        row_ids = row0 + lax.broadcasted_iota(jnp.int32, (tile_rows, LANES), 0)
        sq = jnp.where(row_ids < rows, sq, 0.0)

    if tile_rows % 8 == 0:
        # Layout-preserving fold over complete sublane groups: pure VPU adds,
        # no cross-lane reduce on the loop-carried accumulator.
        part = sq.reshape(tile_rows // 8, 8, LANES).sum(axis=0)
    else:
        # Tiny-input path (only reachable when grid axis 1 has a single step).
        col = jnp.sum(sq, axis=0, keepdims=True)                 # (1, LANES)
        sub = lax.broadcasted_iota(jnp.int32, (8, LANES), 0)
        part = jnp.where(sub == 0, jnp.broadcast_to(col, (8, LANES)), 0.0)
    acc_ref[...] += part

    @pl.when(i == pl.num_programs(1) - 1)
    def _():
        # Single cross-lane reduce per core, once, at the very end.
        o_ref[...] = jnp.zeros((1, OUT_LANES), jnp.float32) + jnp.sum(acc_ref[...])


# --------------------------------------------------------------------------
# Wrappers
# --------------------------------------------------------------------------
def xae_forward(x):
    """XAE_abstract.forward (Identity enc -> Identity dec) as ONE copy kernel."""
    total = x.size
    max_tile_rows, vmem_limit = _chip_budget()
    slab, rows, padded = _slab_view(x)
    tile_rows = min(max_tile_rows, rows)
    grid = ((rows + tile_rows - 1) // tile_rows,)   # ragged last block: OOB writes masked

    out = pl.pallas_call(
        _identity_copy_kernel,
        out_shape=jax.ShapeDtypeStruct((rows, LANES), x.dtype),
        grid_spec=pltpu.PrefetchScalarGridSpec(
            num_scalar_prefetch=0,
            grid=grid,
            in_specs=[pl.BlockSpec((tile_rows, LANES), lambda i: (i, 0))],
            out_specs=pl.BlockSpec((tile_rows, LANES), lambda i: (i, 0)),
        ),
        compiler_params=pltpu.CompilerParams(
            dimension_semantics=("parallel",),       # megacore-shardable on v7x
            vmem_limit_bytes=vmem_limit,
        ),
    )(slab)

    if padded:
        return out.reshape(-1)[:total].reshape(x.shape)
    return out.reshape(x.shape)


def xae_main_loss(x, y):
    """XAE_abstract.main_loss (nn.MSELoss) as a dual-split tiled reduction."""
    assert x.shape == y.shape
    total = x.size
    max_tile_rows, vmem_limit = _chip_budget()
    xs, rows, _ = _slab_view(x)     # zero pad (fallback only) contributes 0 to the sum
    ys, _, _ = _slab_view(y)
    tile_rows = min(max_tile_rows, rows)
    blocks_total = (rows + tile_rows - 1) // tile_rows
    bpc = (blocks_total + NUM_SPLITS - 1) // NUM_SPLITS   # row blocks per split/core
    masked = (NUM_SPLITS * bpc * tile_rows != rows)       # static: tail/duplicate blocks?

    def in_map(c, i):
        # Clamp so the DMA never starts past the slab; a clamped duplicate
        # block is zeroed by the in-kernel row mask.
        return (jnp.minimum(c * bpc + i, blocks_total - 1), 0)

    kern = functools.partial(
        _mse_kernel, rows=rows, tile_rows=tile_rows, bpc=bpc, masked=masked)

    partials = pl.pallas_call(
        kern,
        out_shape=jax.ShapeDtypeStruct((1, NUM_SPLITS * OUT_LANES), jnp.float32),
        grid_spec=pltpu.PrefetchScalarGridSpec(
            num_scalar_prefetch=0,
            grid=(NUM_SPLITS, bpc),
            in_specs=[
                pl.BlockSpec((tile_rows, LANES), in_map),
                pl.BlockSpec((tile_rows, LANES), in_map),
            ],
            out_specs=pl.BlockSpec((1, OUT_LANES), lambda c, i: (0, c)),
            scratch_shapes=[pltpu.VMEM((8, LANES), jnp.float32)],
        ),
        compiler_params=pltpu.CompilerParams(
            dimension_semantics=("parallel", "arbitrary"),
            vmem_limit_bytes=vmem_limit,
        ),
    )(xs, ys)

    # Combine per-core partial sums and normalise by 1/total on the host side.
    per_core = partials.reshape(NUM_SPLITS, OUT_LANES)[:, 0]
    return jnp.sum(per_core) / total


# --------------------------------------------------------------------------
# Module mirror
# --------------------------------------------------------------------------
class XAEAbstractPallas:
    """JAX/Pallas mirror of XAE_abstract's compute methods.

    enc / dec are nn.Identity() modules (no parameters).
    """

    def __init__(self, z_dim=8):
        self.z_dim = z_dim
        # nn.Identity() has no weights; nothing to initialize.
        # TODO(synk): training loop / optimizer / LR scheduler / checkpointing
        # / tensorboard / DataLoader plumbing in the PyTorch module is
        # host-side orchestration, not kernel work.

    def encode(self, x):
        return x            # enc = nn.Identity(): pure pass-through

    def decode(self, z):
        return z            # dec = nn.Identity(): pure pass-through

    def forward(self, x):
        # decode(encode(x)) == x; realised as exactly ONE Pallas copy kernel.
        return xae_forward(self.decode(self.encode(x)))

    def main_loss(self, x, y):
        return xae_main_loss(x, y)

    def penalty_loss(self, x, y):
        return 0

    def generate_prior(self, n, key):
        # z_sampler stand-in: standard normal prior (glue, not hot path).
        return jax.random.normal(key, (n, self.z_dim), dtype=jnp.float32)

    def generate_sample(self, n, key):
        return self.decode(self.generate_prior(n, key))


# --------------------------------------------------------------------------
# Main
# --------------------------------------------------------------------------
if __name__ == "__main__":
    key = jax.random.PRNGKey(0)
    kx, ky = jax.random.split(key)

    # Small NCHW image batch consistent with the autoencoder forward.
    x = jax.random.normal(kx, (2, 4, 16, 16), dtype=jnp.float32)

    model = XAEAbstractPallas(z_dim=8)

    recon = jax.block_until_ready(model.forward(x))

    # Forward is Identity -> reconstruction must equal the input exactly.
    assert recon.shape == x.shape
    assert recon.dtype == x.dtype
    assert bool(jnp.all(recon == x))

    # main_loss (MSE) sanity check against plain JAX reference.
    y = jax.random.normal(ky, (2, 4, 16, 16), dtype=jnp.float32)
    loss = jax.block_until_ready(model.main_loss(x, y))
    ref = jnp.mean((x - y) ** 2)
    assert jnp.allclose(loss, ref, rtol=1e-6, atol=1e-6)

    # loss(x, forward(x)) == 0 since forward is identity.
    zero_loss = jax.block_until_ready(model.main_loss(x, recon))
    assert float(zero_loss) == 0.0

    print("KERNEL_OK")
</pallas_src>

<mosaic_0001>
module attributes {stable_mosaic.version = 11 : i64} {
  func.func @_identity_copy_kernel(%arg0: i32, %arg1: memref<4x512xf32, #tpu.memory_space<vmem>>, %arg2: memref<4x512xf32, #tpu.memory_space<vmem>>) attributes {dimension_semantics = [#tpu.dimension_semantics<parallel>], iteration_bounds = array<i64: 1>, scalar_prefetch = 0 : i64, scratch_operands = 0 : i64, tpu.core_type = #tpu.core_type<tc>, window_params = [{transform_indices = @transform_0, window_bounds = array<i64: 4, 512>}, {transform_indices = @transform_1, window_bounds = array<i64: 4, 512>}]} {
    %c0 = arith.constant 0 : index
    %c0_0 = arith.constant 0 : index
    %0 = vector.load %arg1[%c0, %c0_0] : memref<4x512xf32, #tpu.memory_space<vmem>>, vector<4x512xf32>
    %c0_1 = arith.constant 0 : index
    %c0_2 = arith.constant 0 : index
    %1 = vector.load %arg2[%c0_1, %c0_2] : memref<4x512xf32, #tpu.memory_space<vmem>>, vector<4x512xf32>
    tpu.vector_store %arg2[%c0_1, %c0_2], %0 {strides = array<i32>} : memref<4x512xf32, #tpu.memory_space<vmem>>, vector<4x512xf32>,
    return
  }
  func.func @transform_0(%arg0: i32) -> (i32, i32) {
    %c0_i32 = arith.constant 0 : i32
    %c0_i32_0 = arith.constant 0 : i32
    return %arg0, %c0_i32 : i32, i32
  }
  func.func @transform_1(%arg0: i32) -> (i32, i32) {
    %c0_i32 = arith.constant 0 : i32
    %c0_i32_0 = arith.constant 0 : i32
    return %arg0, %c0_i32 : i32, i32
  }
}

</mosaic_0001>

<bundles_post_ra>
// kernel: tpu_custom_call.1
= control target key start
LH: loop header
LB: loop body
LE: loop exit
PB: predicated region body
PF: predicated region fallthrough
CT: control target
= control target key end

     0   :  { %6 = vsyncpa [#allocation3], 0  ;;  %s104_s0 = inlined_call_operand.hbm [shape: f32[4,512], index: 0, kind: input, shape index: {}]   ;;  %s105_s1 = inlined_call_operand.hbm [shape: f32[4,512], index: 1, kind: output, shape index: {}]  }
   0x1   :  { %7 = vsyncpa [#allocation4], 0  ;;  %s86_s6 = smov [#allocation2]  }
   0x2   :  { %s14_s7 = sshll.u32 %s86_s6, 4  ;;  %s15_s7 = int_to_ptr.vmem [resolvable:$true] %s14_s7 }
   0x3   :  { %s50_s8 = scalar_lea.vmem %s15_s7, 256  ;;  %p55_p1 = scmp.lt.s32.totalorder %s15_s7, %s15_s7 }
   0x4   :  { %p51_p0 = scmp.ne.s32.totalorder %s15_s7, %s50_s8  ;;  %p56_p2 = scmp.lt.s32.totalorder %s50_s8, %s50_s8 }
   0x6   :  { %p57_p3 = por %p56_p2, %p55_p1 }
   0x8   :  { %p58_p4 = pnand %p57_p3, %p51_p0 }
   0xa   :  { %61 = shalt.err (!%p58_p4)
}
   0xb   :  { %17 = dma.hbm_to_vmem [thread:$0]  %s104_s0, 256, %s15_s7, [#allocation3]  }
   0xc   :  { %82 = dma.done.wait [#allocation3], 256  }
   0xd   :  { %83 = vsyncadd [#allocation3], 4294967040  ;;  %s87_s11 = smov [#allocation5]   ;;  %v21_v0 = vld [vmem:[#allocation2] sm:$0xff]  ;;  %v22_v1 = vld [vmem:[#allocation2 + $0x8] sm:$0xff] }
   0xe   :  { %s31_s12 = sshll.u32 %s87_s11, 4  ;;  %23 = vst [vmem:[#allocation5] sm:$0xff] %v21_v0  ;;  %24 = vst [vmem:[#allocation5 + $0x8] sm:$0xff] %v22_v1  ;;  %s32_s12 = int_to_ptr.vmem [resolvable:$true] %s31_s12 }
   0xf   :  { %s62_s13 = scalar_lea.vmem %s32_s12, 256  ;;  %p67_p6 = scmp.lt.s32.totalorder %s32_s12, %s32_s12 }
  0x10   :  { %p63_p5 = scmp.ne.s32.totalorder %s32_s12, %s62_s13  ;;  %p68_p7 = scmp.lt.s32.totalorder %s62_s13, %s62_s13 }
  0x12   :  { %p69_p8 = por %p68_p7, %p67_p6 }
  0x14   :  { %p70_p9 = pnand %p69_p8, %p63_p5 }
  0x16   :  { %73 = shalt.err (!%p70_p9)
}
  0x17   :  { %34 = dma.vmem_to_hbm [thread:$0]  %s32_s12, 256, %s105_s1, [#allocation4]  }
  0x18   :  { %84 = dma.done.wait [#allocation4], 256  }
  0x19   :  { %85 = vsyncadd [#allocation4], 4294967040 }
  0x1a   :  { %38 = vsyncpa [#allocation3], 1 }
  0x1b   :  { %39 = vsyncpa [#allocation4], 1 }

</bundles_post_ra>
